<compile_context>
chip_gen: v7x
topology: tpu7x:2x2x1
jax: 0.10.0
libtpu: 0.0.40
codegen_flags: <defaults>
</compile_context>

<pallas_src>
import functools

import jax
import jax.numpy as jnp
from jax.experimental import pallas as pl
from jax.experimental.pallas import tpu as pltpu


def _round_up(x, m):
    return ((x + m - 1) // m) * m


def _vmem_capacity_bytes():
    """Device VMEM capacity with a conservative fallback (v7x-sized)."""
    try:
        return int(pltpu.get_tpu_info().vmem_capacity_bytes)
    except Exception:
        return 64 * 1024 * 1024


def _c2mpir_kernel(c_ref, wc_ref, ws_ref, vc_ref, vs_ref, o_ref, *,
                   inv_nfft, has_nyquist):
    # c_ref : (TB, M+1)       cepstrum tile
    # wc_ref: (M+1, kp)       cos(2*pi*m*k/N)            (padded lanes zeroed)
    # ws_ref: (M+1, kp)      -sin(2*pi*m*k/N)            (padded lanes zeroed)
    # vc_ref: (kp, Npad)      w_k*cos(2*pi*k*n/N)/N      (padded rows zeroed)
    # vs_ref: (kp, Npad)     -w_k*sin(2*pi*k*n/N)/N      (padded rows zeroed)
    # o_ref : (TB, Npad)      impulse response (lane-padded)
    c = c_ref[...].astype(jnp.float32)

    # Forward half-spectrum: two small-K MXU dots (no fused dot + slicing,
    # which could materialize VMEM copies of the two halves).
    a = jnp.dot(c, wc_ref[...], preferred_element_type=jnp.float32)  # Re C_k
    b = jnp.dot(c, ws_ref[...], preferred_element_type=jnp.float32)  # Im C_k

    # exp(C_k) = exp(A)*(cos(B) + i*sin(B))  (EUP transcendentals).
    # Padded lanes (k >= kh) give exp(0)=1, cos(0)=1, sin(0)=0 and are
    # neutralized only because the matching rows of vc/vs are zeroed — keep
    # the masking in _dft_matrices in sync with this.
    mag = jnp.exp(a)
    er = (mag * jnp.cos(b)).astype(vc_ref.dtype)   # Re exp(C_k)
    ei = (mag * jnp.sin(b)).astype(vs_ref.dtype)   # Im exp(C_k)

    # Weighted real inverse DFT over the vectorized bins: two MXU dots with
    # f32 accumulation (inputs may be bf16 if the caller opted in).
    h = (jnp.dot(er, vc_ref[...], preferred_element_type=jnp.float32)
         + jnp.dot(ei, vs_ref[...], preferred_element_type=jnp.float32))

    if has_nyquist:
        # Rank-1 Nyquist correction: C_{N/2} = sum_m c_m*(-1)^m is real, so
        # its contribution to h[n] is exp(C_{N/2}) * (-1)^n / N.
        m1 = c.shape[-1]
        npad = h.shape[-1]
        midx = jax.lax.broadcasted_iota(jnp.int32, (1, m1), 1)
        sgn_m = jnp.where(midx % 2 == 0, 1.0, -1.0).astype(jnp.float32)
        s_nyq = jnp.sum(c * sgn_m, axis=-1, keepdims=True)          # (TB, 1)
        nidx = jax.lax.broadcasted_iota(jnp.int32, (1, npad), 1)
        sgn_n = jnp.where(nidx % 2 == 0, inv_nfft, -inv_nfft).astype(jnp.float32)
        h = h + jnp.exp(s_nyq) * sgn_n

    o_ref[...] = h.astype(o_ref.dtype)


def _dft_matrices(cep_order, ir_length, n_fft, idft_dtype=jnp.float32):
    """Split, lane-padded half-spectrum DFT bases (Nyquist bin excluded)."""
    m1 = cep_order + 1
    has_nyq = (n_fft % 2 == 0)
    # Vectorized bins: k = 0 .. n_fft/2 - 1 (even n_fft, Nyquist handled as a
    # rank-1 correction in the kernel) or k = 0 .. (n_fft-1)/2 (odd n_fft).
    kh = n_fft // 2 if has_nyq else (n_fft + 1) // 2
    kp = _round_up(kh, 128)              # lane-padded half-spectrum width
    npad = _round_up(ir_length, 128)     # lane-dense output width

    assert cep_order * max(kp - 1, 1) < 2**31, "DFT index overflow (int32)"
    assert (kp - 1) * max(npad - 1, 1) < 2**31, "DFT index overflow (int32)"

    m = jnp.arange(m1)
    k = jnp.arange(kp)
    n = jnp.arange(npad)
    valid = k < kh                       # padded bins contribute nothing

    # Forward half-spectrum bases (angles reduced mod n_fft for accuracy).
    ang_f = (jnp.mod(jnp.outer(m, k), n_fft).astype(jnp.float32)
             * (2.0 * jnp.pi / n_fft))                          # (M+1, kp)
    wc = jnp.where(valid[None, :], jnp.cos(ang_f), 0.0).astype(jnp.float32)
    ws = jnp.where(valid[None, :], -jnp.sin(ang_f), 0.0).astype(jnp.float32)

    # Conjugate-symmetry weights: 1 for k=0, 2 for the interior bins; padded
    # bins zeroed (this neutralizes exp(0)=1 on padded lanes — see kernel);
    # 1/n_fft is the IDFT scale.
    wk = jnp.where(k == 0, 1.0, 2.0)
    wk = jnp.where(valid, wk, 0.0) / n_fft

    ang_i = (jnp.mod(jnp.outer(k, n), n_fft).astype(jnp.float32)
             * (2.0 * jnp.pi / n_fft))                          # (kp, Npad)
    vc = (wk[:, None] * jnp.cos(ang_i)).astype(idft_dtype)
    vs = (-wk[:, None] * jnp.sin(ang_i)).astype(idft_dtype)
    return wc, ws, vc, vs, kp, npad, has_nyq


@functools.partial(jax.jit,
                   static_argnames=("cep_order", "ir_length", "n_fft",
                                    "block_b", "bf16_idft"))
def c2mpir(c, *, cep_order, ir_length, n_fft=512, block_b=512,
           bf16_idft=False):
    """Convert cepstrum (..., M+1) -> minimum phase impulse response (..., N).

    bf16_idft: opt-in bf16 inputs (f32 accumulation) for the dominant second
    matmul; only worthwhile when ir_length is large (MXU-bound regime) and the
    accuracy loss has been verified for the use case.
    """
    m1 = cep_order + 1
    assert 0 <= cep_order
    assert 1 <= ir_length
    assert c.shape[-1] == m1, "dimension of cepstrum mismatch"
    assert max(m1, ir_length) <= n_fft

    batch_shape = c.shape[:-1]
    cb = c.reshape(-1, m1)
    b = cb.shape[0]

    wdtype = jnp.bfloat16 if bf16_idft else jnp.float32
    wc, ws, vc, vs, kp, npad, has_nyq = _dft_matrices(
        cep_order, ir_length, n_fft, idft_dtype=wdtype)

    # ---------------- VMEM budget & batch-tile selection ----------------
    vmem_cap = _vmem_capacity_bytes()
    m1_pad = _round_up(m1, 8)
    wbytes = 2 if bf16_idft else 4
    # Double-buffered weight blocks (constant index_map, still 2 buffers).
    # TODO(synk): single-buffer the constant weight blocks with
    # pipeline_mode=pl.Buffered(1) (and/or bf16 EUP on v6e/v7x) once verified
    # on the target jax version; halves weight VMEM for very large n_fft/ir.
    bytes_weights = 2 * (2 * m1_pad * kp * 4 + 2 * kp * npad * wbytes)
    bytes_per_row = 4 * (2 * npad            # double-buffered output tile
                         + 2 * 128           # double-buffered cepstrum tile
                         + 6 * kp            # a, b, mag, er, ei temps (bound)
                         + 2 * npad)         # h temp + headroom
    budget = int(0.8 * vmem_cap)
    avail = budget - bytes_weights
    max_rows = max(8, (avail // bytes_per_row) // 8 * 8) if avail > 0 else 8
    eff_block_b = max(8, min(block_b, max_rows))

    # Keep grid >= 2 whenever the batch allows it so 'parallel' can shard the
    # grid across both TensorCores on dual-TC parts (v7x); no effect on
    # single-TC v5e/v6e.
    tb = min(eff_block_b, _round_up(-(-b // 2), 8))
    b_pad = _round_up(b, tb)
    if b_pad != b:
        cb = jnp.pad(cb, ((0, b_pad - b), (0, 0)))
    grid = (b_pad // tb,)

    est_vmem = bytes_weights + tb * bytes_per_row
    vmem_limit = int(min(max(2 * est_vmem, 64 << 20), int(0.9 * vmem_cap)))
    vmem_limit = max(vmem_limit, 16 << 20)

    flops = 2 * b_pad * kp * (2 * m1 + 2 * npad)
    transcendentals = b_pad * (3 * kp + (1 if has_nyq else 0))
    bytes_accessed = (4 * (b_pad * m1 + b_pad * npad)
                      + 4 * (wc.size + ws.size)
                      + wbytes * (vc.size + vs.size))

    out = pl.pallas_call(
        functools.partial(_c2mpir_kernel,
                          inv_nfft=1.0 / n_fft,
                          has_nyquist=has_nyq),
        out_shape=jax.ShapeDtypeStruct((b_pad, npad), jnp.float32),
        grid_spec=pltpu.PrefetchScalarGridSpec(
            num_scalar_prefetch=0,
            grid=grid,
            in_specs=[
                pl.BlockSpec((tb, m1), lambda i: (i, 0)),
                pl.BlockSpec((m1, kp), lambda i: (0, 0)),
                pl.BlockSpec((m1, kp), lambda i: (0, 0)),
                pl.BlockSpec((kp, npad), lambda i: (0, 0)),
                pl.BlockSpec((kp, npad), lambda i: (0, 0)),
            ],
            out_specs=pl.BlockSpec((tb, npad), lambda i: (i, 0)),
        ),
        compiler_params=pltpu.CompilerParams(
            dimension_semantics=("parallel",),
            vmem_limit_bytes=vmem_limit),
        cost_estimate=pl.CostEstimate(
            flops=flops,
            transcendentals=transcendentals,
            bytes_accessed=bytes_accessed),
    )(cb, wc, ws, vc, vs)

    out = out[:b, :ir_length].reshape(*batch_shape, ir_length)
    return out.astype(c.dtype)


def _reference(c, ir_length, n_fft):
    # Pure-JAX reference mirroring the PyTorch module.
    C = jnp.fft.fft(c, n=n_fft)
    h = jnp.fft.ifft(jnp.exp(C)).real[..., :ir_length]
    return h.astype(c.dtype)


if __name__ == "__main__":
    cep_order = 7      # M -> cepstrum has M+1 = 8 coefficients
    ir_length = 16     # N
    n_fft = 128

    key = jax.random.PRNGKey(0)
    # Small-magnitude cepstra keep exp() well conditioned (as in practice).
    c = 0.3 * jax.random.normal(key, (2, 4, cep_order + 1), dtype=jnp.float32)

    h = c2mpir(c, cep_order=cep_order, ir_length=ir_length, n_fft=n_fft)
    h = jax.block_until_ready(h)

    h_ref = _reference(c, ir_length, n_fft)
    assert h.shape == (2, 4, ir_length)
    assert jnp.allclose(h, h_ref, rtol=1e-3, atol=1e-4), (
        "mismatch vs FFT reference")

    print("KERNEL_OK")
</pallas_src>

<mosaic_0001>
module attributes {stable_mosaic.version = 11 : i64} {
  func.func @_c2mpir_kernel(%arg0: i32, %arg1: memref<8x8xf32, #tpu.memory_space<vmem>>, %arg2: memref<8x128xf32, #tpu.memory_space<vmem>>, %arg3: memref<8x128xf32, #tpu.memory_space<vmem>>, %arg4: memref<128x128xf32, #tpu.memory_space<vmem>>, %arg5: memref<128x128xf32, #tpu.memory_space<vmem>>, %arg6: memref<8x128xf32, #tpu.memory_space<vmem>>) attributes {dimension_semantics = [#tpu.dimension_semantics<parallel>], iteration_bounds = array<i64: 1>, scalar_prefetch = 0 : i64, scratch_operands = 0 : i64, tpu.core_type = #tpu.core_type<tc>, window_params = [{transform_indices = @transform_0, window_bounds = array<i64: 8, 8>}, {pipeline_mode = #tpu.pipeline_mode<synchronous>, transform_indices = @transform_1, window_bounds = array<i64: 8, 128>}, {pipeline_mode = #tpu.pipeline_mode<synchronous>, transform_indices = @transform_2, window_bounds = array<i64: 8, 128>}, {pipeline_mode = #tpu.pipeline_mode<synchronous>, transform_indices = @transform_3, window_bounds = array<i64: 128, 128>}, {pipeline_mode = #tpu.pipeline_mode<synchronous>, transform_indices = @transform_4, window_bounds = array<i64: 128, 128>}, {transform_indices = @transform_5, window_bounds = array<i64: 8, 128>}]} {
    %c0 = arith.constant 0 : index
    %c0_0 = arith.constant 0 : index
    %0 = vector.load %arg1[%c0, %c0_0] : memref<8x8xf32, #tpu.memory_space<vmem>>, vector<8x8xf32>
    %c0_1 = arith.constant 0 : index
    %c0_2 = arith.constant 0 : index
    %1 = vector.load %arg2[%c0_1, %c0_2] : memref<8x128xf32, #tpu.memory_space<vmem>>, vector<8x128xf32>
    %cst = arith.constant dense<0.000000e+00> : vector<8x128xf32>
    %2 = tpu.matmul %0, %1, %cst {dimension_numbers = #tpu.dot_dimension_numbers<[1], [0], [0], [1], [0, 0, 1, 1], [], []>} : vector<8x8xf32>, vector<8x128xf32>, vector<8x128xf32> -> vector<8x128xf32>
    %c0_3 = arith.constant 0 : index
    %c0_4 = arith.constant 0 : index
    %3 = vector.load %arg3[%c0_3, %c0_4] : memref<8x128xf32, #tpu.memory_space<vmem>>, vector<8x128xf32>
    %cst_5 = arith.constant dense<0.000000e+00> : vector<8x128xf32>
    %4 = tpu.matmul %0, %3, %cst_5 {dimension_numbers = #tpu.dot_dimension_numbers<[1], [0], [0], [1], [0, 0, 1, 1], [], []>} : vector<8x8xf32>, vector<8x128xf32>, vector<8x128xf32> -> vector<8x128xf32>
    %5 = math.exp %2 : vector<8x128xf32>
    %6 = math.cos %4 : vector<8x128xf32>
    %7 = arith.mulf %5, %6 : vector<8x128xf32>
    %8 = math.sin %4 : vector<8x128xf32>
    %9 = arith.mulf %5, %8 : vector<8x128xf32>
    %c0_6 = arith.constant 0 : index
    %c0_7 = arith.constant 0 : index
    %10 = vector.load %arg4[%c0_6, %c0_7] : memref<128x128xf32, #tpu.memory_space<vmem>>, vector<128x128xf32>
    %cst_8 = arith.constant dense<0.000000e+00> : vector<8x128xf32>
    %11 = tpu.matmul %7, %10, %cst_8 {dimension_numbers = #tpu.dot_dimension_numbers<[1], [0], [0], [1], [0, 0, 1, 1], [], []>} : vector<8x128xf32>, vector<128x128xf32>, vector<8x128xf32> -> vector<8x128xf32>
    %c0_9 = arith.constant 0 : index
    %c0_10 = arith.constant 0 : index
    %12 = vector.load %arg5[%c0_9, %c0_10] : memref<128x128xf32, #tpu.memory_space<vmem>>, vector<128x128xf32>
    %cst_11 = arith.constant dense<0.000000e+00> : vector<8x128xf32>
    %13 = tpu.matmul %9, %12, %cst_11 {dimension_numbers = #tpu.dot_dimension_numbers<[1], [0], [0], [1], [0, 0, 1, 1], [], []>} : vector<8x128xf32>, vector<128x128xf32>, vector<8x128xf32> -> vector<8x128xf32>
    %14 = arith.addf %11, %13 : vector<8x128xf32>
    %15 = tpu.iota {dimensions = array<i32: 1>} : vector<1x8xi32>
    %c2_i32 = arith.constant 2 : i32
    %c0_i32 = arith.constant 0 : i32
    %16 = arith.cmpi eq, %c2_i32, %c0_i32 : i32
    %c1_i32 = arith.constant 1 : i32
    %17 = arith.select %16, %c1_i32, %c2_i32 : i32
    %18 = vector.broadcast %17 : i32 to vector<1x8xi32>
    %19 = arith.remsi %15, %18 : vector<1x8xi32>
    %c0_i32_12 = arith.constant 0 : i32
    %20 = vector.broadcast %c0_i32_12 : i32 to vector<1x8xi32>
    %21 = arith.cmpi ne, %19, %20 : vector<1x8xi32>
    %c0_i32_13 = arith.constant 0 : i32
    %22 = vector.broadcast %c0_i32_13 : i32 to vector<1x8xi32>
    %23 = arith.cmpi slt, %19, %22 : vector<1x8xi32>
    %c0_i32_14 = arith.constant 0 : i32
    %24 = arith.cmpi slt, %17, %c0_i32_14 : i32
    %25 = vector.broadcast %24 : i1 to vector<1x8xi1>
    %26 = vector.broadcast %25 : vector<1x8xi1> to vector<1x8xi1>
    %27 = arith.xori %23, %26 : vector<1x8xi1>
    %28 = arith.andi %27, %21 : vector<1x8xi1>
    %29 = vector.broadcast %17 : i32 to vector<1x8xi32>
    %30 = arith.addi %19, %29 : vector<1x8xi32>
    %31 = arith.select %28, %30, %19 : vector<1x8xi1>, vector<1x8xi32>
    %c0_i32_15 = arith.constant 0 : i32
    %32 = vector.broadcast %c0_i32_15 : i32 to vector<1x8xi32>
    %33 = arith.cmpi eq, %31, %32 : vector<1x8xi32>
    %cst_16 = arith.constant 1.000000e+00 : f32
    %cst_17 = arith.constant -1.000000e+00 : f32
    %34 = vector.broadcast %cst_16 : f32 to vector<1x8xf32>
    %35 = vector.broadcast %cst_17 : f32 to vector<1x8xf32>
    %36 = arith.select %33, %34, %35 : vector<1x8xi1>, vector<1x8xf32>
    %37 = vector.broadcast %36 : vector<1x8xf32> to vector<8x8xf32>
    %38 = arith.mulf %0, %37 : vector<8x8xf32>
    %cst_18 = arith.constant dense<0.000000e+00> : vector<8xf32>
    %39 = vector.multi_reduction <add>, %38, %cst_18 [1] : vector<8x8xf32> to vector<8xf32>
    %40 = vector.shape_cast %39 : vector<8xf32> to vector<8x1xf32>
    %41 = tpu.iota {dimensions = array<i32: 1>} : vector<1x128xi32>
    %c2_i32_19 = arith.constant 2 : i32
    %c0_i32_20 = arith.constant 0 : i32
    %42 = arith.cmpi eq, %c2_i32_19, %c0_i32_20 : i32
    %c1_i32_21 = arith.constant 1 : i32
    %43 = arith.select %42, %c1_i32_21, %c2_i32_19 : i32
    %44 = vector.broadcast %43 : i32 to vector<1x128xi32>
    %45 = arith.remsi %41, %44 : vector<1x128xi32>
    %c0_i32_22 = arith.constant 0 : i32
    %46 = vector.broadcast %c0_i32_22 : i32 to vector<1x128xi32>
    %47 = arith.cmpi ne, %45, %46 : vector<1x128xi32>
    %c0_i32_23 = arith.constant 0 : i32
    %48 = vector.broadcast %c0_i32_23 : i32 to vector<1x128xi32>
    %49 = arith.cmpi slt, %45, %48 : vector<1x128xi32>
    %c0_i32_24 = arith.constant 0 : i32
    %50 = arith.cmpi slt, %43, %c0_i32_24 : i32
    %51 = vector.broadcast %50 : i1 to vector<1x128xi1>
    %52 = vector.broadcast %51 : vector<1x128xi1> to vector<1x128xi1>
    %53 = arith.xori %49, %52 : vector<1x128xi1>
    %54 = arith.andi %53, %47 : vector<1x128xi1>
    %55 = vector.broadcast %43 : i32 to vector<1x128xi32>
    %56 = arith.addi %45, %55 : vector<1x128xi32>
    %57 = arith.select %54, %56, %45 : vector<1x128xi1>, vector<1x128xi32>
    %c0_i32_25 = arith.constant 0 : i32
    %58 = vector.broadcast %c0_i32_25 : i32 to vector<1x128xi32>
    %59 = arith.cmpi eq, %57, %58 : vector<1x128xi32>
    %cst_26 = arith.constant 7.812500e-03 : f32
    %cst_27 = arith.constant -7.812500e-03 : f32
    %60 = vector.broadcast %cst_26 : f32 to vector<1x128xf32>
    %61 = vector.broadcast %cst_27 : f32 to vector<1x128xf32>
    %62 = arith.select %59, %60, %61 : vector<1x128xi1>, vector<1x128xf32>
    %63 = math.exp %40 : vector<8x1xf32>
    %64 = vector.broadcast %63 : vector<8x1xf32> to vector<8x128xf32>
    %65 = vector.broadcast %62 : vector<1x128xf32> to vector<8x128xf32>
    %66 = arith.mulf %64, %65 : vector<8x128xf32>
    %67 = arith.addf %14, %66 : vector<8x128xf32>
    %c0_28 = arith.constant 0 : index
    %c0_29 = arith.constant 0 : index
    %68 = vector.load %arg6[%c0_28, %c0_29] : memref<8x128xf32, #tpu.memory_space<vmem>>, vector<8x128xf32>
    tpu.vector_store %arg6[%c0_28, %c0_29], %67 {strides = array<i32>} : memref<8x128xf32, #tpu.memory_space<vmem>>, vector<8x128xf32>,
    return
  }
  func.func @transform_0(%arg0: i32) -> (i32, i32) {
    %c0_i32 = arith.constant 0 : i32
    %c0_i32_0 = arith.constant 0 : i32
    return %arg0, %c0_i32 : i32, i32
  }
  func.func @transform_1(%arg0: i32) -> (i32, i32) {
    %c0_i32 = arith.constant 0 : i32
    %c0_i32_0 = arith.constant 0 : i32
    %c0_i32_1 = arith.constant 0 : i32
    return %c0_i32, %c0_i32_0 : i32, i32
  }
  func.func @transform_2(%arg0: i32) -> (i32, i32) {
    %c0_i32 = arith.constant 0 : i32
    %c0_i32_0 = arith.constant 0 : i32
    %c0_i32_1 = arith.constant 0 : i32
    return %c0_i32, %c0_i32_0 : i32, i32
  }
  func.func @transform_3(%arg0: i32) -> (i32, i32) {
    %c0_i32 = arith.constant 0 : i32
    %c0_i32_0 = arith.constant 0 : i32
    %c0_i32_1 = arith.constant 0 : i32
    return %c0_i32, %c0_i32_0 : i32, i32
  }
  func.func @transform_4(%arg0: i32) -> (i32, i32) {
    %c0_i32 = arith.constant 0 : i32
    %c0_i32_0 = arith.constant 0 : i32
    %c0_i32_1 = arith.constant 0 : i32
    return %c0_i32, %c0_i32_0 : i32, i32
  }
  func.func @transform_5(%arg0: i32) -> (i32, i32) {
    %c0_i32 = arith.constant 0 : i32
    %c0_i32_0 = arith.constant 0 : i32
    return %arg0, %c0_i32 : i32, i32
  }
}

</mosaic_0001>

<bundles_post_ra>
// kernel: c2mpir.1
= control target key start
LH: loop header
LB: loop body
LE: loop exit
PB: predicated region body
PF: predicated region fallthrough
CT: control target
= control target key end

     0   :  { %vm23_vm0 = vcmask 64512   ;;  %v815_v3 = vmov 0.0   ;;  %vm816_vm1 = vmmov 0   ;;  %s1030_s0 = inlined_call_operand.vmem [shape: f32[8,8], index: 0, kind: input, shape index: {}]   ;;  %s1031_s1 = inlined_call_operand.vmem [shape: f32[8,128], index: 1, kind: input, shape index: {}]   ;;  %s1032_s2 = inlined_call_operand.vmem [shape: f32[8,128], index: 2, kind: input, shape index: {}]   ;;  %s1033_s3 = inlined_call_operand.vmem [shape: f32[128,128], index: 3, kind: input, shape index: {}]   ;;  %s1034_s4 = inlined_call_operand.vmem [shape: f32[128,128], index: 4, kind: input, shape index: {}]   ;;  %s1035_s5 = inlined_call_operand.hbm [shape: f32[8,128], index: 5, kind: output, shape index: {}]  }
   0x1   :  { %v97_v0 = vld [vmem:[%s1032_s2] sm:$0xff]  ;;  %644 = vmatprep.subr.mxu1 %v815_v3  ;;  %646 = vmatprep.mubr.msk.f32.mxu1 %vm816_vm1, %v815_v3 }
   0x2   :  { %v863_v1 = vld [vmem:[%s1030_s0] sm:$0xff] }
   0x3   :  { %v22_v2 = vld [vmem:[%s1031_s1] sm:$0xff] }
   0x4   :  { %10 = vsyncpa [#allocation3], 0  ;;  %645 = vmatpush3.msra.mxu1 %v97_v0  ;;  %639 = vmatprep.subr.mxu0 %v815_v3  ;;  %v395_v4 = vld [vmem:[%s1034_s4] sm:$0xff]  ;;  %v396_v5 = vld [vmem:[%s1034_s4 + $0x8] sm:$0xff]  ;;  %v817_v9 = vmov 0.0|0.0   ;;  %v551_v53 = vlaneseq  ;;  %v818_v57 = vmov -1.0  }
   0x5   :  { %647 = vmatmul.mubr.msk.f32.vlgmr.msra.gmra.mrb[0].mxu1 %vm23_vm0, %v863_v1  ;;  %640 = vmatpush3.msra.mxu0 %v22_v2  ;;  %v379_v6 = vld [vmem:[%s1033_s3] sm:$0xff]  ;;  %v720_v7 = vpack.c.bf16 %v396_v5, %v395_v4  ;;  %v380_v8 = vld [vmem:[%s1033_s3 + $0x8] sm:$0xff]  ;;  %v397_v11 = vld [vmem:[%s1034_s4 + $0x10] sm:$0xff] }
   0x6   :  { %641 = vmatprep.mubr.msk.f32.mxu0 %vm816_vm1, %v815_v3  ;;  %716 = vmatprep.mubr.msk.f32.mxu1 %vm816_vm1, %v815_v3  ;;  %v744_v10 = vpack.c.bf16 %v380_v8, %v379_v6  ;;  %v398_v12 = vld [vmem:[%s1034_s4 + $0x18] sm:$0xff]  ;;  %v381_v13 = vld [vmem:[%s1033_s3 + $0x10] sm:$0xff]  ;;  %v399_v17 = vld [vmem:[%s1034_s4 + $0x20] sm:$0xff]  ;;  %v552_v54 = vand.u32 127, %v551_v53 }
   0x7   :  { %642 = vmatmul.mubr.msk.f32.vlgmr.msra.gmra.mrb[0].mxu0 %vm23_vm0, %v863_v1  ;;  %719 = vmatprep.subr.bf16.mxu0 %v817_v9  ;;  %v723_v14 = vpack.c.bf16 %v398_v12, %v397_v11  ;;  %v382_v15 = vld [vmem:[%s1033_s3 + $0x18] sm:$0xff]  ;;  %v400_v18 = vld [vmem:[%s1034_s4 + $0x28] sm:$0xff]  ;;  %v383_v19 = vld [vmem:[%s1033_s3 + $0x20] sm:$0xff]  ;;  %v819_v11 = vmov 683565275  }
   0x8   :  { %681 = vmatprep.mubr.msk.f32.mxu0 %vm816_vm1, %v815_v3  ;;  %743 = vmatprep.subr.bf16.mxu1 %v817_v9  ;;  %v747_v16 = vpack.c.bf16 %v382_v15, %v381_v13  ;;  %v726_v20 = vpack.c.bf16 %v400_v18, %v399_v17  ;;  %v384_v21 = vld [vmem:[%s1033_s3 + $0x28] sm:$0xff]  ;;  %v401_v23 = vld [vmem:[%s1034_s4 + $0x30] sm:$0xff]  ;;  %v402_v24 = vld [vmem:[%s1034_s4 + $0x38] sm:$0xff]  ;;  %v557_v55 = vand.u32 1, %v552_v54  ;;  %v820_v13 = vmov 2475754826  }
   0x9   :  { %721 = vmatpush3.bf16.msra.mxu0 %v720_v7  ;;  %745 = vmatpush3.bf16.msra.mxu1 %v744_v10  ;;  %v750_v22 = vpack.c.bf16 %v384_v21, %v383_v19  ;;  %v385_v25 = vld [vmem:[%s1033_s3 + $0x30] sm:$0xff]  ;;  %v729_v26 = vpack.c.bf16 %v402_v24, %v401_v23  ;;  %v386_v27 = vld [vmem:[%s1033_s3 + $0x38] sm:$0xff]  ;;  %v403_v29 = vld [vmem:[%s1034_s4 + $0x40] sm:$0xff]  ;;  %v822_v19 = vmov 2102212464  }
   0xa   :  { %722 = vmatprep.subr.bf16.mxu0 %v817_v9  ;;  %746 = vmatprep.subr.bf16.mxu1 %v817_v9  ;;  %v753_v28 = vpack.c.bf16 %v386_v27, %v385_v25  ;;  %v404_v30 = vld [vmem:[%s1034_s4 + $0x48] sm:$0xff]  ;;  %v387_v31 = vld [vmem:[%s1033_s3 + $0x40] sm:$0xff]  ;;  %v405_v34 = vld [vmem:[%s1034_s4 + $0x50] sm:$0xff]  ;;  %vm984_vm2 = vcmp.eq.s32.totalorder %v557_v55, 0  ;;  %v824_v25 = vmov 1326507024  }
   0xb   :  { %v732_v32 = vpack.c.bf16 %v404_v30, %v403_v29  ;;  %v388_v33 = vld [vmem:[%s1033_s3 + $0x48] sm:$0xff]  ;;  %v406_v35 = vld [vmem:[%s1034_s4 + $0x58] sm:$0xff]  ;;  %v389_v37 = vld [vmem:[%s1033_s3 + $0x50] sm:$0xff]  ;;  %v566_v58 = vsel %vm984_vm2, 1.0, %v818_v57 }
   0xc   :  { %v756_v36 = vpack.c.bf16 %v388_v33, %v387_v31  ;;  %v390_v38 = vld [vmem:[%s1033_s3 + $0x58] sm:$0xff]  ;;  %v735_v39 = vpack.c.bf16 %v406_v35, %v405_v34  ;;  %v407_v41 = vld [vmem:[%s1034_s4 + $0x60] sm:$0xff]  ;;  %v408_v42 = vld [vmem:[%s1034_s4 + $0x68] sm:$0xff]  ;;  %v567_v59 = vmul.f32 %v566_v58, %v863_v1 }
   0xd   :  { %724 = vmatpush3.bf16.msra.mxu0 %v723_v14  ;;  %748 = vmatpush3.bf16.msra.mxu1 %v747_v16  ;;  %v759_v40 = vpack.c.bf16 %v390_v38, %v389_v37  ;;  %v391_v43 = vld [vmem:[%s1033_s3 + $0x60] sm:$0xff]  ;;  %v392_v44 = vld [vmem:[%s1033_s3 + $0x68] sm:$0xff]  ;;  %v738_v45 = vpack.c.bf16 %v408_v42, %v407_v41  ;;  %v409_v47 = vld [vmem:[%s1034_s4 + $0x70] sm:$0xff]  ;;  %v821_v16 = vmov 2131351028  }
   0xe   :  { %725 = vmatprep.subr.bf16.mxu0 %v817_v9  ;;  %749 = vmatprep.subr.bf16.mxu1 %v817_v9  ;;  %v762_v46 = vpack.c.bf16 %v392_v44, %v391_v43  ;;  %v410_v48 = vld [vmem:[%s1034_s4 + $0x78] sm:$0xff]  ;;  %v393_v49 = vld [vmem:[%s1033_s3 + $0x70] sm:$0xff]  ;;  %v568_v60 = vsel %vm23_vm0, %v567_v59, 0.0 }
   0xf   :  { %v394_v50 = vld [vmem:[%s1033_s3 + $0x78] sm:$0xff]  ;;  %v741_v51 = vpack.c.bf16 %v410_v48, %v409_v47  ;;  %569 = vadd.xlane.f32.xlu0 %v568_v60  ;;  %s826_s3 = smov [#allocation2]  }
  0x10   :  { %v765_v52 = vpack.c.bf16 %v394_v50, %v393_v49  ;;  %s583_s4 = sshll.u32 %s826_s3, 4  ;;  %s584_s4 = int_to_ptr.vmem [resolvable:$true] %s583_s4 }
  0x11   :  { %727 = vmatpush3.bf16.msra.mxu0 %v726_v20  ;;  %751 = vmatpush3.bf16.msra.mxu1 %v750_v22  ;;  %v823_v22 = vmov 920167782   ;;  %s791_s29 = scalar_lea.vmem %s584_s4, 128  ;;  %p796_p1 = scmp.lt.s32.totalorder %s584_s4, %s584_s4 }
  0x12   :  { %728 = vmatprep.subr.bf16.mxu0 %v817_v9  ;;  %752 = vmatprep.subr.bf16.mxu1 %v817_v9  ;;  %p792_p0 = scmp.ne.s32.totalorder %s584_s4, %s791_s29  ;;  %p797_p2 = scmp.lt.s32.totalorder %s791_s29, %s791_s29 }
  0x14   :  { %p798_p3 = por %p797_p2, %p796_p1 }
  0x15   :  { %730 = vmatpush3.bf16.msra.mxu0 %v729_v26  ;;  %754 = vmatpush3.bf16.msra.mxu1 %v753_v28 }
  0x16   :  { %731 = vmatprep.subr.bf16.mxu0 %v817_v9  ;;  %755 = vmatprep.subr.bf16.mxu1 %v817_v9  ;;  %p799_p4 = pnand %p798_p3, %p792_p0 }
  0x19   :  { %733 = vmatpush3.bf16.msra.mxu0 %v732_v32  ;;  %757 = vmatpush3.bf16.msra.mxu1 %v756_v36 }
  0x1a   :  { %734 = vmatprep.subr.bf16.mxu0 %v817_v9  ;;  %758 = vmatprep.subr.bf16.mxu1 %v817_v9 }
  0x1d   :  { %736 = vmatpush3.bf16.msra.mxu0 %v735_v39  ;;  %760 = vmatpush3.bf16.msra.mxu1 %v759_v40 }
  0x1e   :  { %737 = vmatprep.subr.bf16.mxu0 %v817_v9  ;;  %761 = vmatprep.subr.bf16.mxu1 %v817_v9 }
  0x21   :  { %739 = vmatpush3.bf16.msra.mxu0 %v738_v45  ;;  %763 = vmatpush3.bf16.msra.mxu1 %v762_v46 }
  0x22   :  { %740 = vmatprep.subr.bf16.mxu0 %v817_v9  ;;  %764 = vmatprep.subr.bf16.mxu1 %v817_v9 }
  0x25   :  { %742 = vmatpush3.bf16.msra.mxu0 %v741_v51  ;;  %766 = vmatpush3.bf16.msra.mxu1 %v765_v52 }
  0xd8   :  { %v992_v61 = vpop.f32.mrb[0].mxu1 }
  0xd9   :  { %v173_v62 = vand.u32 2139095040, %v992_v61  ;;  %v648_v63 = vpop.f32.mrb[1].mxu1  ;;  %v170_v6 = vand.u32 2147483647, %v992_v61  ;;  %vm172_vm10 = vcmp.lt.s32.totalorder %v992_v61, 0 }
  0xda   :  { %v995_v0 = vpop.f32.mrb[0].mxu0 }
  0xdb   :  { %v174_v2 = vshrl.u32 %v173_v62, 23  ;;  %v643_v3 = vpop.f32.mrb[1].mxu0  ;;  %v177_v1 = vand.u32 8388607, %v170_v6  ;;  %vm171_vm11 = vcmp.le.f32.partialorder %v170_v6, 0.7853982 }
  0xdd   :  { %v593_v4 = vadd.s32 4294967169, %v174_v2  ;;  %v178_v27 = vor.u32 8388608, %v177_v1 }
  0xdf   :  { %v180_v5 = vadd.s32 1, %v593_v4  ;;  %v218_v41 = vshll.u32 %v178_v27, 8 }
  0xe1   :  { %vm181_vm3 = vcmp.gt.s32.totalorder %v180_v5, 0 }
  0xe2   :  { %v182_v7 = vsel %vm181_vm3, %v180_v5, 0  ;;  %vm262_vm3 = vweird.f32 %v992_v61 }
  0xe3   :  { %v184_v8 = vand.u32 31, %v182_v7  ;;  %v183_v10 = vshrl.u32 %v182_v7, 5 }
  0xe5   :  { %v185_v9 = vsub.s32 32, %v184_v8  ;;  %v187_v12 = vshll.u32 %v819_v11, %v184_v8  ;;  %v190_v14 = vshll.u32 %v820_v13, %v184_v8  ;;  %v193_v18 = vshll.u32 %v821_v16, %v184_v8 }
  0xe6   :  { %v196_v21 = vshll.u32 %v822_v19, %v184_v8  ;;  %v199_v24 = vshll.u32 %v823_v22, %v184_v8  ;;  %vm202_vm4 = vcmp.lt.s32.totalorder %v183_v10, 1  ;;  %vm205_vm5 = vcmp.lt.s32.totalorder %v183_v10, 4 }
  0xe7   :  { %v188_v15 = vshrl.u32 %v820_v13, %v185_v9  ;;  %v191_v17 = vshrl.u32 %v821_v16, %v185_v9  ;;  %v194_v20 = vshrl.u32 %v822_v19, %v185_v9  ;;  %v197_v23 = vshrl.u32 %v823_v22, %v185_v9 }
  0xe8   :  { %v200_v26 = vshrl.u32 %v824_v25, %v185_v9  ;;  %v186_v36 = vshrl.u32 %v819_v11, %v185_v9  ;;  %vm204_vm6 = vcmp.lt.s32.totalorder %v183_v10, 3  ;;  %vm203_vm7 = vcmp.lt.s32.totalorder %v183_v10, 2 }
  0xe9   :  { %v189_v28 = vor.u32 %v188_v15, %v187_v12  ;;  %v192_v29 = vor.u32 %v191_v17, %v190_v14  ;;  %v195_v30 = vor.u32 %v194_v20, %v193_v18  ;;  %v198_v31 = vor.u32 %v197_v23, %v196_v21 }
  0xea   :  { %v201_v32 = vor.u32 %v200_v26, %v199_v24  ;;  %v168_v21 = vmul.f32 1.442695, %v995_v0 }
  0xeb   :  { %v207_v33 = vsel %vm205_vm5, %v195_v30, 2102212464  ;;  %v210_v34 = vsel %vm202_vm4, %v189_v28, %v192_v29  ;;  %v214_v35 = vsel %vm202_vm4, %v192_v29, %v195_v30  ;;  %v211_v37 = vsel %vm205_vm5, %v198_v31, 920167782 }
  0xec   :  { %v215_v38 = vsel %vm205_vm5, %v201_v32, 1326507024  ;;  %v212_v39 = vsel %vm204_vm6, %v195_v30, %v211_v37  ;;  %v206_v42 = vsel %vm202_vm4, %v186_v36, %v189_v28  ;;  %v208_v43 = vsel %vm204_vm6, %v192_v29, %v207_v33 }
  0xed   :  { %v216_v40 = vsel %vm204_vm6, %v198_v31, %v215_v38  ;;  %v213_v44 = vsel %vm203_vm7, %v210_v34, %v212_v39  ;;  %v209_v50 = vsel %vm203_vm7, %v206_v42, %v208_v43  ;;  %v570_v39 = vpop.xlane.xlu0 %569  ;;  %v825_v42 = vmov -0.0078125  }
  0xee   :  { %v217_v45 = vsel %vm203_vm7, %v214_v35, %v216_v40  ;;  %v1003_v48 = vmul.u32.u64.low %v218_v41, %v213_v44  ;;  %v1004_v49 = vmul.u32.u64.high %v218_v41, %v213_v44, %v1003_v48  ;;  %v225_v52 = vmul.u32 %v218_v41, %v209_v50 }
  0xef   :  { %v1000_v46 = vmul.u32.u64.low %v218_v41, %v217_v45  ;;  %v1001_v47 = vmul.u32.u64.high %v218_v41, %v217_v45, %v1000_v46  ;;  %v572_v40 = vmul.f32 1.442695, %v570_v39  ;;  %v571_v43 = vsel %vm984_vm2, 0.0078125, %v825_v42 }
  0xf0   :  { %v228_v51 = vadd.s32 1, %v1004_v49 }
  0xf1   :  { %vm227_vm8 = vc.u32 %v1001_v47, %v1003_v48  ;;  %v226_v4 = vadd.s32 %v1003_v48, %v1001_v47 }
  0xf2   :  { %v229_v53 = vsel %vm227_vm8, %v228_v51, %v1004_v49 }
  0xf3   :  { %v230_v54 = vadd.s32 %v229_v53, %v225_v52 }
  0xf5   :  { %v231_v55 = vadd.s32 536870912, %v230_v54 }
  0xf7   :  { %v232_v57 = vshrl.u32 %v231_v55, 30 }
  0xf9   :  { %v233_v58 = vshll.u32 %v232_v57, 30  ;;  %v256_v16 = vsub.s32 4, %v232_v57 }
  0xfb   :  { %v234_v59 = vsub.s32 %v230_v54, %v233_v58  ;;  %v257_v19 = vsel %vm172_vm10, %v256_v16, %v232_v57 }
  0xfc   :  { %v259_v22 = vsel %vm171_vm11, 0, %v257_v19 }
  0xfd   :  { %v236_v60 = vsub.s32 0, %v234_v59  ;;  %v367_v23 = vadd.s32 3, %v259_v22  ;;  %v263_v24 = vand.u32 3, %v259_v22 }
  0xff   :  { %v594_v62 = vmin.u32 %v236_v60, %v234_v59  ;;  %v368_v25 = vand.u32 3, %v367_v23  ;;  %vm268_vm13 = vcmp.eq.s32.totalorder %v263_v24, 2  ;;  %vm265_vm15 = vcmp.eq.s32.totalorder %v263_v24, 0 }
 0x100   :  { %vm264_vm1 = vcmp.lt.s32.totalorder %v263_v24, 2 }
 0x101   :  { %v238_v63 = vclz %v594_v62  ;;  %vm373_vm12 = vcmp.eq.s32.totalorder %v368_v25, 2  ;;  %vm370_vm14 = vcmp.eq.s32.totalorder %v368_v25, 0  ;;  %vm369_vm0 = vcmp.lt.s32.totalorder %v368_v25, 2 }
 0x103   :  { %v595_v2 = vadd.s32 4294967294, %v238_v63 }
 0x105   :  { %vm596_vm9 = vcmp.lt.s32.totalorder %v595_v2, 0 }
 0x106   :  { %v241_v3 = vsel %vm596_vm9, 0, %v595_v2 }
 0x107   :  { %v242_v5 = vsub.s32 32, %v241_v3  ;;  %v246_v7 = vsub.s32 4294967266, %v241_v3  ;;  %v243_v8 = vshll.u32 %v234_v59, %v241_v3 }
 0x109   :  { %v244_v1 = vshrl.u32 %v226_v4, %v242_v5  ;;  %v247_v9 = vadd.s32 127, %v246_v7 }
 0x10b   :  { %v245_v10 = vor.u32 %v244_v1, %v243_v8  ;;  %v248_v11 = vshll.u32 %v247_v9, 23 }
 0x10d   :  { %v249_v12 = vor.u32 4788187, %v248_v11  ;;  %v252_v14 = vcvt.s32.f32 %v245_v10 }
 0x10f   :  { %v250_v13 = vand.u32 2147483647, %v249_v12 }
 0x111   :  { %v253_v15 = vmul.f32 %v252_v14, %v250_v13 }
 0x113   :  { %v254_v17 = vxor.u32 2147483648, %v253_v15 }
 0x115   :  { %v255_v18 = vsel %vm172_vm10, %v254_v17, %v253_v15 }
 0x116   :  { %v258_v20 = vsel %vm171_vm11, %v992_v61, %v255_v18 }
 0x117   :  { %783 = vcosq.f32 %v258_v20 }
 0x118   :  { %785 = vsinq.f32 %v258_v20 }
 0x119   :  { %787 = vpow2.f32 %v168_v21 }
 0x11a   :  { %789 = vpow2.f32 %v572_v40 }
 0x121   :  { %v784_v26 = vpop.eup %783 }
 0x122   :  { %v786_v27 = vpop.eup %785  ;;  %v269_v28 = vxor.u32 2147483648, %v784_v26 }
 0x123   :  { %v266_v29 = vxor.u32 2147483648, %v786_v27  ;;  %v788_v31 = vpop.eup %787 }
 0x124   :  { %v375_v6 = vsel %vm373_vm12, %v269_v28, %v786_v27  ;;  %v270_v30 = vsel %vm268_vm13, %v269_v28, %v786_v27  ;;  %v790_v41 = vpop.eup %789 }
 0x125   :  { %v372_v32 = vsel %vm370_vm14, %v784_v26, %v266_v29  ;;  %v267_v0 = vsel %vm265_vm15, %v784_v26, %v266_v29  ;;  %v574_v44 = vmul.f32 %v790_v41, %v571_v43 }
 0x126   :  { %v376_v33 = vsel %vm369_vm0, %v372_v32, %v375_v6  ;;  %v271_v34 = vsel %vm264_vm1, %v267_v0, %v270_v30 }
 0x127   :  { %v377_v35 = vsel %vm262_vm3, nan, %v376_v33  ;;  %v272_v36 = vsel %vm262_vm3, nan, %v271_v34 }
 0x128   :  { %v378_v37 = vmul.f32 %v788_v31, %v377_v35  ;;  %v273_v38 = vmul.f32 %v788_v31, %v272_v36 }
 0x12a   :  { %682 = vmatmul.mubr.f32.vlgmr.msra.gmra.mrb[2].mxu0 %v378_v37  ;;  %717 = vmatmul.mubr.f32.vlgmr.msra.gmra.mrb[2].mxu1 %v273_v38 }
 0x1fd   :  { %v477_v45 = vpop.f32.mrb[2].mxu0  ;;  %v547_v46 = vpop.f32.mrb[2].mxu1 }
 0x1fe   :  { %v548_v61 = vadd.f32 %v547_v46, %v477_v45  ;;  %v683_v47 = vpop.f32.mrb[3].mxu0  ;;  %v718_v48 = vpop.f32.mrb[3].mxu1 }
 0x200   :  { %v575_v49 = vadd.f32 %v574_v44, %v548_v61 }
 0x202   :  { %576 = vst [vmem:[#allocation2] sm:$0xff] %v575_v49 }
 0x203   :  { %802 = shalt.err (!%p799_p4)
}
 0x204   :  { %s803_s7 = scalar_lea.hbm %s1035_s5, 128 }
 0x205   :  { %p804_p5 = scmp.ne.s32.totalorder %s1035_s5, %s803_s7  ;;  %p807_p6 = scmp.lt.u32.totalorder %s803_s7, %s1035_s5 }
 0x207   :  { %p809_p7 = pnand %p807_p6, %p804_p5 }
 0x209   :  { %812 = shalt.err (!%p809_p7)
}
 0x20a   :  { %586 = dma.vmem_to_hbm [thread:$0]  %s584_s4, 128, %s1035_s5, [#allocation3]  }
 0x20b   :  { %813 = dma.done.wait [#allocation3], 128  }
 0x20c   :  { %814 = vsyncadd [#allocation3], 4294967168 }
 0x20d   :  { %590 = vsyncpa [#allocation3], 1 }

</bundles_post_ra>
